<compile_context>
chip_gen: v7x
topology: tpu7x:2x2x1
jax: 0.10.0
libtpu: 0.0.40
codegen_flags: <defaults>
</compile_context>

<pallas_src>
import functools

import jax
import jax.numpy as jnp
import numpy as np
from jax.experimental import pallas as pl
from jax.experimental.pallas import tpu as pltpu


def _round_up(x, m):
    return (x + m - 1) // m * m


def _dep_kernel(z_ref, s_ref, out_ref,
                gz_acc, zs_acc, ssum_acc,
                *, n, tile_n, num_feat_cols, one_hot_s, inv_n, scale, ragged):
    i = pl.program_id(0)

    @pl.when(i == 0)
    def _init():
        gz_acc[...] = jnp.zeros_like(gz_acc)
        zs_acc[...] = jnp.zeros_like(zs_acc)
        ssum_acc[...] = jnp.zeros_like(ssum_acc)

    z = z_ref[...]                                   # (T, D), native dtype
    t = z.shape[0]
    c_aug = zs_acc.shape[1]

    if ragged:
        # Mask rows whose global index is >= N (last-tile OOB reads contain
        # unspecified data).  jnp.where (select) so garbage NaNs cannot leak.
        row = jax.lax.broadcasted_iota(jnp.int32, (t, 1), 0) + i * tile_n
        row_valid = row < n                          # (T, 1) bool
        z = jnp.where(row_valid, z, jnp.zeros_like(z))

    # Build the lane-padded sensitive-attribute block [s | 1 | 0...] in-kernel.
    cls = jax.lax.broadcasted_iota(jnp.int32, (t, c_aug), 1)
    if one_hot_s:
        lab = s_ref[...]                             # (T, 1) int32 labels
        hit = (cls == lab) | (cls == num_feat_cols)  # one-hot + ones column
        if ragged:
            hit = hit & row_valid
        s_aug = hit.astype(jnp.float32)
    else:
        sval = s_ref[...].astype(jnp.float32)        # (T, 1) attribute values
        s_aug = jnp.where(cls == 0, sval,
                          jnp.where(cls == num_feat_cols, 1.0, 0.0))
        if ragged:
            s_aug = jnp.where(row_valid, s_aug, 0.0)

    # Match the MXU operand dtype of z (bf16 exact for 0/1 one-hot entries).
    s_mx = s_aug if z.dtype == jnp.float32 else s_aug.astype(z.dtype)

    # Contract over the batch (row) axis directly: no explicit .T, MXU
    # contraction dim is TILE_N; accumulate in f32.
    dn = (((0,), (0,)), ((), ()))
    gz_acc[...] += jax.lax.dot_general(z, z, dn,
                                       preferred_element_type=jnp.float32)
    zs_acc[...] += jax.lax.dot_general(z, s_mx, dn,
                                       preferred_element_type=jnp.float32)
    ssum_acc[...] += jnp.sum(s_aug, axis=0, keepdims=True)   # (1, C_aug)

    @pl.when(i == pl.num_programs(0) - 1)
    def _finalize():
        zs = zs_acc[...]                                       # (D, C_aug)
        zsum = zs[:, num_feat_cols:num_feat_cols + 1]          # (D, 1) = z^T 1
        # A = z^T H s ; columns >= num_feat_cols come out exactly 0, so the
        # padded width does not perturb the trace.
        a = zs - inv_n * (zsum * ssum_acc[...])
        ga = jnp.dot(gz_acc[...], a, preferred_element_type=jnp.float32)
        out_ref[0, 0] = jnp.sum(a * ga) * scale


def dep_loss(z, s, *, num_classes, one_hot_s=True, norm=None, tile_n=1024):
    """JAX/Pallas equivalent of DEPLoss.forward with linear kernels.

    z : (N, D) float (f32 or bf16) representation
    s : (N,) integer labels if one_hot_s else (N,) / (N,1) float attribute
    """
    z = jnp.asarray(z)
    if z.dtype not in (jnp.float32, jnp.bfloat16):
        z = z.astype(jnp.float32)
    z = z.reshape(z.shape[0], -1)
    n, d = z.shape

    if one_hot_s:
        s_fmt = jnp.asarray(s).reshape(-1, 1).astype(jnp.int32)    # labels
        c = int(num_classes)
    else:
        s_fmt = jnp.asarray(s).reshape(-1, 1).astype(jnp.float32)  # values
        c = 1
    c_aug = _round_up(c + 1, 128)          # feature cols + ones col, lane-padded

    tile_n = int(min(int(tile_n), _round_up(n, 8)))
    tile_n = _round_up(tile_n, 8)
    grid_n = -(-n // tile_n)
    ragged = (n % tile_n) != 0

    # Centering / normalization always use the ORIGINAL batch size N.
    scale = 1.0 if norm is None else 1.0 / (float(norm) * n)
    kernel = functools.partial(
        _dep_kernel, n=n, tile_n=tile_n, num_feat_cols=c, one_hot_s=one_hot_s,
        inv_n=1.0 / n, scale=scale, ragged=ragged)

    # Triple-buffer the z stream when the per-step matmul is short (small D)
    # and the grid is long enough for the extra buffer to matter.
    n_buf = 3 if (d <= 512 and grid_n >= 4) else 2
    if n_buf == 3:
        z_spec = pl.BlockSpec((tile_n, d), lambda i: (i, 0),
                              pipeline_mode=pl.Buffered(3))
    else:
        z_spec = pl.BlockSpec((tile_n, d), lambda i: (i, 0))

    # Explicit VMEM budget: pipeline buffers + f32 accumulators (with (8,128)
    # physical padding), plus headroom.
    z_bytes = jnp.dtype(z.dtype).itemsize
    d_sub, d_lane = _round_up(d, 8), _round_up(d, 128)
    vmem_need = (n_buf * tile_n * (d_lane * z_bytes + 128 * 4)
                 + d_sub * d_lane * 4 + d_sub * c_aug * 4 + 8 * c_aug * 4)
    vmem_limit = int(min(max(int(vmem_need * 1.5) + (1 << 20), 8 << 20), 100 << 20))

    cost = pl.CostEstimate(
        flops=int(2 * n * d * (d + c_aug)),
        transcendentals=0,
        bytes_accessed=int(n * d * z_bytes + n * jnp.dtype(s_fmt.dtype).itemsize + 4))

    dep = pl.pallas_call(
        kernel,
        out_shape=jax.ShapeDtypeStruct((1, 1), jnp.float32),
        grid_spec=pltpu.PrefetchScalarGridSpec(
            num_scalar_prefetch=0,
            grid=(grid_n,),
            in_specs=[
                z_spec,                                      # z rows (native dtype)
                pl.BlockSpec((tile_n, 1), lambda i: (i, 0)),  # labels / s values
            ],
            out_specs=pl.BlockSpec(memory_space=pltpu.MemorySpace.SMEM),
            scratch_shapes=[
                pltpu.VMEM((d, d), jnp.float32),      # Gz  = z^T z
                pltpu.VMEM((d, c_aug), jnp.float32),  # z^T [s | 1 | 0...]
                pltpu.VMEM((1, c_aug), jnp.float32),  # 1^T [s | 1 | 0...]
            ],
        ),
        compiler_params=pltpu.CompilerParams(
            dimension_semantics=("arbitrary",),   # batch axis is a reduction
            vmem_limit_bytes=vmem_limit,
        ),
        cost_estimate=cost,
    )(z, s_fmt)[0, 0]
    return dep


def _reference(z, s, *, num_classes, one_hot_s=True, norm=None):
    # Host-side numpy float64 reference mirroring the PyTorch forward exactly.
    z = np.asarray(jnp.asarray(z, jnp.float32)).astype(np.float64)
    z = z.reshape(z.shape[0], -1)
    n = z.shape[0]
    if one_hot_s:
        lab = np.asarray(s).reshape(-1).astype(np.int64)
        s_f = np.zeros((n, int(num_classes)), np.float64)
        s_f[np.arange(n), lab] = 1.0
    else:
        s_f = np.asarray(jnp.asarray(s, jnp.float32)).astype(np.float64).reshape(-1, 1)
    h = np.eye(n) - np.ones((n, n)) / n
    k_s = s_f @ s_f.T
    k_z = z @ z.T
    k_sm = h @ k_s            # mean_center dim=0
    k_sm = h @ k_sm.T         # mean_center of transpose, dim=0
    k_zm = h @ k_z
    dep = np.trace(k_zm.T @ k_sm @ k_zm)
    if norm is not None:
        dep = dep / (float(norm) * n)
    return dep


def _check(got, ref, tol, name):
    got = float(np.asarray(jax.device_get(got)))
    ref = float(ref)
    rel = abs(got - ref) / max(abs(ref), 1e-30)
    assert rel < tol, (name, got, ref, rel)


if __name__ == "__main__":
    key = jax.random.PRNGKey(0)
    kz, ks, kv, kz2, ks2, kz3, ks3 = jax.random.split(key, 7)

    # 1) Small one-hot case: 2-step grid, exercises streaming accumulation.
    N, D, C = 32, 16, 4
    z = jax.random.normal(kz, (N, D), dtype=jnp.float32)
    s = jax.random.randint(ks, (N,), 0, C, dtype=jnp.int32)
    dep = jax.block_until_ready(
        dep_loss(z, s, num_classes=C, one_hot_s=True, norm=None, tile_n=16))
    _check(dep, _reference(z, s, num_classes=C, one_hot_s=True, norm=None),
           5e-3, "onehot_small")

    # 2) Continuous sensitive attribute with normalization.
    s_val = jax.random.normal(kv, (N,), dtype=jnp.float32)
    dep2 = jax.block_until_ready(
        dep_loss(z, s_val, num_classes=C, one_hot_s=False, norm=2.0, tile_n=16))
    _check(dep2, _reference(z, s_val, num_classes=C, one_hot_s=False, norm=2.0),
           5e-3, "continuous")

    # 3) Ragged batch (N not a multiple of tile_n) + triple-buffered z stream.
    N3, D3, C3 = 1000, 128, 7
    z3 = jax.random.normal(kz2, (N3, D3), dtype=jnp.float32)
    s3 = jax.random.randint(ks2, (N3,), 0, C3, dtype=jnp.int32)
    dep3 = jax.block_until_ready(
        dep_loss(z3, s3, num_classes=C3, one_hot_s=True, norm=3.0, tile_n=128))
    _check(dep3, _reference(z3, s3, num_classes=C3, one_hot_s=True, norm=3.0),
           1e-2, "ragged_f32")

    # 4) Native bf16 streaming path (f32 accumulation).
    N4, D4, C4 = 256, 64, 4
    z4 = jax.random.normal(kz3, (N4, D4), dtype=jnp.bfloat16)
    s4 = jax.random.randint(ks3, (N4,), 0, C4, dtype=jnp.int32)
    dep4 = jax.block_until_ready(
        dep_loss(z4, s4, num_classes=C4, one_hot_s=True, norm=None, tile_n=64))
    _check(dep4, _reference(z4, s4, num_classes=C4, one_hot_s=True, norm=None),
           5e-2, "bf16")

    print("KERNEL_OK")
</pallas_src>

<mosaic_0001>
module attributes {stable_mosaic.version = 11 : i64} {
  func.func @_dep_kernel(%arg0: i32, %arg1: memref<16x16xf32, #tpu.memory_space<vmem>>, %arg2: memref<16x1xi32, #tpu.memory_space<vmem>>, %arg3: memref<1x1xf32, #tpu.memory_space<smem>>, %arg4: memref<16x16xf32, #tpu.memory_space<vmem>>, %arg5: memref<16x128xf32, #tpu.memory_space<vmem>>, %arg6: memref<1x128xf32, #tpu.memory_space<vmem>>) attributes {dimension_semantics = [#tpu.dimension_semantics<arbitrary>], iteration_bounds = array<i64: 2>, scalar_prefetch = 0 : i64, scratch_operands = 3 : i64, tpu.core_type = #tpu.core_type<tc>, window_params = [{transform_indices = @transform_0, window_bounds = array<i64: 16, 16>}, {transform_indices = @transform_1, window_bounds = array<i64: 16, 1>}, {transform_indices = @transform_2, window_bounds = array<i64: 1, 1>}]} {
    %c0_i32 = arith.constant 0 : i32
    %0 = arith.cmpi eq, %arg0, %c0_i32 : i32
    %1 = arith.extui %0 : i1 to i32
    %c0_i32_0 = arith.constant 0 : i32
    %2 = arith.cmpi ne, %1, %c0_i32_0 : i32
    scf.if %2 {
      %cst_19 = arith.constant 0.000000e+00 : f32
      %29 = vector.broadcast %cst_19 : f32 to vector<16x16xf32>
      %c0_20 = arith.constant 0 : index
      %c0_21 = arith.constant 0 : index
      %30 = vector.load %arg4[%c0_20, %c0_21] : memref<16x16xf32, #tpu.memory_space<vmem>>, vector<16x16xf32>
      tpu.vector_store %arg4[%c0_20, %c0_21], %29 {strides = array<i32>} : memref<16x16xf32, #tpu.memory_space<vmem>>, vector<16x16xf32>,
      %cst_22 = arith.constant 0.000000e+00 : f32
      %31 = vector.broadcast %cst_22 : f32 to vector<16x128xf32>
      %c0_23 = arith.constant 0 : index
      %c0_24 = arith.constant 0 : index
      %32 = vector.load %arg5[%c0_23, %c0_24] : memref<16x128xf32, #tpu.memory_space<vmem>>, vector<16x128xf32>
      tpu.vector_store %arg5[%c0_23, %c0_24], %31 {strides = array<i32>} : memref<16x128xf32, #tpu.memory_space<vmem>>, vector<16x128xf32>,
      %cst_25 = arith.constant 0.000000e+00 : f32
      %33 = vector.broadcast %cst_25 : f32 to vector<1x128xf32>
      %c0_26 = arith.constant 0 : index
      %c0_27 = arith.constant 0 : index
      %34 = vector.load %arg6[%c0_26, %c0_27] : memref<1x128xf32, #tpu.memory_space<vmem>>, vector<1x128xf32>
      tpu.vector_store %arg6[%c0_26, %c0_27], %33 {strides = array<i32>} : memref<1x128xf32, #tpu.memory_space<vmem>>, vector<1x128xf32>,
    } else {
    }
    %c0 = arith.constant 0 : index
    %c0_1 = arith.constant 0 : index
    %3 = vector.load %arg1[%c0, %c0_1] : memref<16x16xf32, #tpu.memory_space<vmem>>, vector<16x16xf32>
    %4 = tpu.iota {dimensions = array<i32: 1>} : vector<16x128xi32>
    %c0_2 = arith.constant 0 : index
    %c0_3 = arith.constant 0 : index
    %5 = vector.load %arg2[%c0_2, %c0_3] : memref<16x1xi32, #tpu.memory_space<vmem>>, vector<16x1xi32>
    %6 = vector.broadcast %5 : vector<16x1xi32> to vector<16x128xi32>
    %7 = arith.cmpi eq, %4, %6 : vector<16x128xi32>
    %c4_i32 = arith.constant 4 : i32
    %8 = vector.broadcast %c4_i32 : i32 to vector<16x128xi32>
    %9 = arith.cmpi eq, %4, %8 : vector<16x128xi32>
    %10 = arith.ori %7, %9 : vector<16x128xi1>
    %11 = arith.extui %10 : vector<16x128xi1> to vector<16x128xi32>
    %12 = arith.sitofp %11 : vector<16x128xi32> to vector<16x128xf32>
    %c0_4 = arith.constant 0 : index
    %c0_5 = arith.constant 0 : index
    %13 = vector.load %arg4[%c0_4, %c0_5] : memref<16x16xf32, #tpu.memory_space<vmem>>, vector<16x16xf32>
    %cst = arith.constant dense<0.000000e+00> : vector<16x16xf32>
    %14 = tpu.matmul %3, %3, %cst {dimension_numbers = #tpu.dot_dimension_numbers<[0], [0], [1], [1], [0, 1, 1, 1], [], []>} : vector<16x16xf32>, vector<16x16xf32>, vector<16x16xf32> -> vector<16x16xf32>
    %15 = arith.addf %13, %14 : vector<16x16xf32>
    %c0_6 = arith.constant 0 : index
    %c0_7 = arith.constant 0 : index
    %16 = vector.load %arg4[%c0_6, %c0_7] : memref<16x16xf32, #tpu.memory_space<vmem>>, vector<16x16xf32>
    tpu.vector_store %arg4[%c0_6, %c0_7], %15 {strides = array<i32>} : memref<16x16xf32, #tpu.memory_space<vmem>>, vector<16x16xf32>,
    %c0_8 = arith.constant 0 : index
    %c0_9 = arith.constant 0 : index
    %17 = vector.load %arg5[%c0_8, %c0_9] : memref<16x128xf32, #tpu.memory_space<vmem>>, vector<16x128xf32>
    %cst_10 = arith.constant dense<0.000000e+00> : vector<16x128xf32>
    %18 = tpu.matmul %3, %12, %cst_10 {dimension_numbers = #tpu.dot_dimension_numbers<[0], [0], [1], [1], [0, 1, 1, 1], [], []>} : vector<16x16xf32>, vector<16x128xf32>, vector<16x128xf32> -> vector<16x128xf32>
    %19 = arith.addf %17, %18 : vector<16x128xf32>
    %c0_11 = arith.constant 0 : index
    %c0_12 = arith.constant 0 : index
    %20 = vector.load %arg5[%c0_11, %c0_12] : memref<16x128xf32, #tpu.memory_space<vmem>>, vector<16x128xf32>
    tpu.vector_store %arg5[%c0_11, %c0_12], %19 {strides = array<i32>} : memref<16x128xf32, #tpu.memory_space<vmem>>, vector<16x128xf32>,
    %c0_13 = arith.constant 0 : index
    %c0_14 = arith.constant 0 : index
    %21 = vector.load %arg6[%c0_13, %c0_14] : memref<1x128xf32, #tpu.memory_space<vmem>>, vector<1x128xf32>
    %cst_15 = arith.constant dense<0.000000e+00> : vector<128xf32>
    %22 = vector.multi_reduction <add>, %12, %cst_15 [0] : vector<16x128xf32> to vector<128xf32>
    %23 = vector.shape_cast %22 : vector<128xf32> to vector<1x128xf32>
    %24 = arith.addf %21, %23 : vector<1x128xf32>
    %c0_16 = arith.constant 0 : index
    %c0_17 = arith.constant 0 : index
    %25 = vector.load %arg6[%c0_16, %c0_17] : memref<1x128xf32, #tpu.memory_space<vmem>>, vector<1x128xf32>
    tpu.vector_store %arg6[%c0_16, %c0_17], %24 {strides = array<i32>} : memref<1x128xf32, #tpu.memory_space<vmem>>, vector<1x128xf32>,
    %c1_i32 = arith.constant 1 : i32
    %26 = arith.cmpi eq, %arg0, %c1_i32 : i32
    %27 = arith.extui %26 : i1 to i32
    %c0_i32_18 = arith.constant 0 : i32
    %28 = arith.cmpi ne, %27, %c0_i32_18 : i32
    scf.if %28 {
      %c0_19 = arith.constant 0 : index
      %c0_20 = arith.constant 0 : index
      %29 = vector.load %arg5[%c0_19, %c0_20] : memref<16x128xf32, #tpu.memory_space<vmem>>, vector<16x128xf32>
      %30 = vector.extract_strided_slice %29 {offsets = [0, 4], sizes = [16, 1], strides = [1, 1]} : vector<16x128xf32> to vector<16x1xf32>
      %c0_21 = arith.constant 0 : index
      %c0_22 = arith.constant 0 : index
      %31 = vector.load %arg6[%c0_21, %c0_22] : memref<1x128xf32, #tpu.memory_space<vmem>>, vector<1x128xf32>
      %32 = vector.broadcast %30 : vector<16x1xf32> to vector<16x128xf32>
      %33 = vector.broadcast %31 : vector<1x128xf32> to vector<16x128xf32>
      %34 = arith.mulf %32, %33 : vector<16x128xf32>
      %cst_23 = arith.constant 3.125000e-02 : f32
      %35 = vector.broadcast %cst_23 : f32 to vector<16x128xf32>
      %36 = arith.mulf %35, %34 : vector<16x128xf32>
      %37 = arith.subf %29, %36 : vector<16x128xf32>
      %c0_24 = arith.constant 0 : index
      %c0_25 = arith.constant 0 : index
      %38 = vector.load %arg4[%c0_24, %c0_25] : memref<16x16xf32, #tpu.memory_space<vmem>>, vector<16x16xf32>
      %cst_26 = arith.constant dense<0.000000e+00> : vector<16x128xf32>
      %39 = tpu.matmul %38, %37, %cst_26 {dimension_numbers = #tpu.dot_dimension_numbers<[1], [0], [0], [1], [0, 0, 1, 1], [], []>} : vector<16x16xf32>, vector<16x128xf32>, vector<16x128xf32> -> vector<16x128xf32>
      %40 = arith.mulf %37, %39 : vector<16x128xf32>
      %41 = vector.shape_cast %40 : vector<16x128xf32> to vector<1x16x128xf32>
      %cst_27 = arith.constant dense<0.000000e+00> : vector<1xf32>
      %42 = vector.multi_reduction <add>, %41, %cst_27 [1, 2] : vector<1x16x128xf32> to vector<1xf32>
      %43 = vector.shape_cast %42 : vector<1xf32> to vector<1x1x1xf32>
      %44 = vector.extract %43[0, 0, 0] : f32 from vector<1x1x1xf32>
      %cst_28 = arith.constant 1.000000e+00 : f32
      %45 = arith.mulf %44, %cst_28 : f32
      %c0_29 = arith.constant 0 : index
      %c0_30 = arith.constant 0 : index
      %46 = memref.load %arg3[%c0_29, %c0_30] : memref<1x1xf32, #tpu.memory_space<smem>>
      memref.store %45, %arg3[%c0_29, %c0_30] : memref<1x1xf32, #tpu.memory_space<smem>>
    } else {
    }
    return
  }
  func.func @transform_0(%arg0: i32) -> (i32, i32) {
    %c0_i32 = arith.constant 0 : i32
    %c0_i32_0 = arith.constant 0 : i32
    return %arg0, %c0_i32 : i32, i32
  }
  func.func @transform_1(%arg0: i32) -> (i32, i32) {
    %c0_i32 = arith.constant 0 : i32
    %c0_i32_0 = arith.constant 0 : i32
    return %arg0, %c0_i32 : i32, i32
  }
  func.func @transform_2(%arg0: i32) -> (i32, i32) {
    %c0_i32 = arith.constant 0 : i32
    %c0_i32_0 = arith.constant 0 : i32
    %c0_i32_1 = arith.constant 0 : i32
    return %c0_i32, %c0_i32_0 : i32, i32
  }
}

</mosaic_0001>

<bundles_post_ra>
// kernel: tpu_custom_call.1
= control target key start
LH: loop header
LB: loop body
LE: loop exit
PB: predicated region body
PF: predicated region fallthrough
CT: control target
= control target key end

     0   :  { %7 = vsyncpa [#allocation6], 0  ;;  %s718_s9 = smov 0   ;;  %s761_s0 = inlined_call_operand.vmem [shape: f32[32,16], index: 0, kind: input, shape index: {}]   ;;  %s762_s1 = inlined_call_operand.vmem [shape: s32[32,1], index: 1, kind: input, shape index: {}]   ;;  %s763_s2 = inlined_call_operand.hbm [shape: f32[1,1], index: 2, kind: output, shape index: {}]  }
   0x1 LB: > { %s724_s10 = sadd.s32 4294967295, %s695_s9   ;;  %p582_p0 = scmp.ge.s32.totalorder %s695_s9, 1  ;;  %s695_s9 = sphi %s718_s9, %s13_s9  }
   0x2   : > { %p120_p1 = scmp.lt.s32.totalorder %s695_s9, 3 }
   0x4   : > { %p121_p2 = pnand %p582_p0, %p120_p1 }
   0x5   : > { %s583_s11 = sshll.u32 (!%p121_p2), %s724_s10, 1  ;;  %p587_p4 = scmp.ne.s32.totalorder (!%p121_p2), %s724_s10, 0 }
   0x6   : > { %124 = sbr.rel (%p121_p2) target bundleno = 965 (0x3c5), region = 28  ;;  %p143_p3 = scmp.lt.s32.totalorder (!%p121_p2), %s583_s11, 3 }
   0xd   : > { %s765_s11 = smov (!%p143_p3, %s583_s11), 3  ;;  %157 = sbr.rel (%p587_p4) target bundleno = 20 (0x14), region = 32 }
   0xe   : > { %s584_s12 = sshll.u32 %s765_s11, 3  ;;  %vm158_vm0 = vcmask (!%p587_p4), 130048   ;;  %v697_v0 = vmov (!%p587_p4), 0.0  }
   0xf   : > { %s146_s15 = scalar_lea.vmem %s761_s0, %s584_s12  ;;  %s152_s18 = scalar_lea.vmem %s762_s1, %s584_s12  ;;  %159 = vst.msk [vmem:[#allocation2] sm:$0xff] (!%p587_p4), %vm158_vm0, %v697_v0  ;;  %160 = vst.msk [vmem:[#allocation2 + $0x8] sm:$0xff] (!%p587_p4), %vm158_vm0, %v697_v0 }
  0x10   : > { %161 = vst [vmem:[#allocation3] sm:$0xff] (!%p587_p4), %v697_v0  ;;  %162 = vst [vmem:[#allocation3 + $0x8] sm:$0xff] (!%p587_p4), %v697_v0 }
  0x11   : > { %163 = vst [vmem:[#allocation4] sm:$0x1] (!%p587_p4), %v697_v0 }
  0x14 PF: > { %v168_v1 = vld [vmem:[%s152_s18] sm:$0xff]  ;;  %v698_v3 = vmov 0   ;;  %v165_v4 = vld [vmem:[%s146_s15 + $0x8] sm:$0xff]  ;;  %v166_v7 = vlaneseq  ;;  %vm219_vm1 = vcmask 130048   ;;  %v699_v13 = vmov 0.0   ;;  %p596_p5 = scmp.ne.s32.totalorder %s724_s10, 1 }
  0x15   : > { %v164_v2 = vld [vmem:[%s146_s15] sm:$0xff]  ;;  %671 = vset.pattern.permute.xlu0 %v698_v3  ;;  %v169_v5 = vld [vmem:[%s152_s18 + $0x8] sm:$0xff]  ;;  %v700_v16 = vmov 1.0|1.0   ;;  %v701_v39 = vmov (!%p596_p5), 4  }
  0x16   : > { %187 = vxpose.xlu1.b32.start [1/2] (short) (narrow) %v164_v2, 16  ;;  %171 = vperm.xlu0 %671, %v168_v1   ;;  %v637_v6 = vpack.c.bf16 %v165_v4, %v164_v2  ;;  %v167_v8 = vand.u32 127, %v166_v7  ;;  %v186_v26 = vld [vmem:[#allocation2 + $0x8] sm:$0xff]  ;;  %v185_v27 = vld [vmem:[#allocation2] sm:$0xff] }
  0x17   : > { %v306_v32 = vld [vmem:[#allocation3 + $0x8] sm:$0xff]  ;;  %v305_v33 = vld [vmem:[#allocation3] sm:$0xff] }
  0x18   : > { %638 = vmatprep.subr.bf16.mxu0 %v637_v6  ;;  %vm178_vm3 = vcmp.eq.s32.totalorder %v167_v8, 4  ;;  %v386_v23 = vld [vmem:[#allocation4] sm:$0x1] }
  0x19   : > { %640 = vmatpush3.bf16.msra.mxu0 %v637_v6 }
  0x1a   : > { %188 = vxpose.xlu1.b32.end [2/2] (short) (narrow) %v165_v4, 16  ;;  %174 = vperm.xlu0 %671, %v169_v5  }
  0x1e   : > { %672 = vset.pattern.permute.xlu0 (!%p596_p5), %v701_v39 }
  0x95   : > { %v172_v9 = vpop.permute.xlu0 %171 }
  0x96   : > { %v203_v10 = vpop.trf.xlu1  ;;  %vm176_vm2 = vcmp.eq.s32.totalorder %v167_v8, %v172_v9 }
  0x97   : > { %620 = vmatprep.mubr.msk.f32.mxu0 %vm219_vm1, %v203_v10  ;;  %627 = vmatprep.mubr.msk.f32.mxu1 %vm219_vm1, %v203_v10  ;;  %vm179_vm4 = vmor %vm176_vm2, %vm178_vm3 }
  0x98   : > { %v588_v14 = vsel %vm179_vm4, 1.0, %v699_v13 }
  0x99   : > { %v175_v11 = vpop.permute.xlu0 %174 }
  0x9a   : > { %v204_v12 = vpop.trf.xlu1  ;;  %vm177_vm5 = vcmp.eq.s32.totalorder %v167_v8, %v175_v11 }
  0x9b   : > { %621 = vmatmul.mubr.msk.f32.vlgmr.msra.gmra.mrb[0].mxu0 %vm219_vm1, %v204_v12  ;;  %vm180_vm6 = vmor %vm177_vm5, %vm178_vm3 }
  0x9c   : > { %v589_v15 = vsel %vm180_vm6, 1.0, %v699_v13  ;;  %vm641_vm7 = vmpackc.low %vm180_vm6, %vm179_vm4 }
  0x9d   : > { %642 = vmatprep.subr.msk.bf16.mxu1 %vm641_vm7, %v700_v16  ;;  %v387_v17 = vadd.f32 %v589_v15, %v588_v14 }
  0x9e   : > { %644 = vmatpush3.bf16.msk.msra.mxu1 %vm641_vm7, %v700_v16 }
  0x9f   : > { %v388_v18 = vrot.slane %v387_v17, 4 }
  0xa1   : > { %v389_v19 = vadd.f32 %v388_v18, %v387_v17  ;;  %628 = vmatmul.mubr.msk.f32.vlgmr.msra.gmra.mrb[0].mxu1 %vm219_vm1, %v204_v12 }
  0xa3   : > { %v390_v20 = vrot.slane %v389_v19, 2 }
  0xa5   : > { %v391_v21 = vadd.f32 %v390_v20, %v389_v19 }
  0xa7   : > { %v392_v22 = vrot.slane %v391_v21, 1 }
  0xa9   : > { %v393_v24 = vadd.f32 %v392_v22, %v391_v21 }
  0xab   : > { %v394_v25 = vadd.f32 %v393_v24, %v386_v23 }
  0xad   : > { %395 = vst [vmem:[#allocation4] sm:$0x1] %v394_v25 }
  0xb4   : > { %v597_v42 = vld [vmem:[#allocation4] ss:$0 sm:$0xff] (!%p596_p5) }
 0x16e   : > { %v622_v28 = vpop.f32.mrb[0].mxu0 }
 0x16f   : > { %v302_v29 = vadd.f32 %v622_v28, %v186_v26  ;;  %v292_v30 = vpop.f32.mrb[1].mxu0 }
 0x170   : > { %v301_v31 = vadd.f32 %v292_v30, %v185_v27 }
 0x171   : > { %304 = vst.msk [vmem:[#allocation2 + $0x8] sm:$0xff] %vm219_vm1, %v302_v29 }
 0x172   : > { %303 = vst.msk [vmem:[#allocation2] sm:$0xff] %vm219_vm1, %v301_v31  ;;  %399 = sbr.rel (%p596_p5) target bundleno = 950 (0x3b6), region = 36 }
 0x174   : > { %v629_v34 = vpop.f32.mrb[0].mxu1 }
 0x175   : > { %v383_v35 = vadd.f32 %v629_v34, %v306_v32  ;;  %v373_v36 = vpop.f32.mrb[1].mxu1 }
 0x176   : > { %v382_v37 = vadd.f32 %v373_v36, %v305_v33 }
 0x177   : > { %385 = vst [vmem:[#allocation3 + $0x8] sm:$0xff] %v383_v35 }
 0x178   : > { %384 = vst [vmem:[#allocation3] sm:$0xff] %v382_v37  ;;  %v426_v52 = vld [vmem:[#allocation2 + $0x8] sm:$0xff] (!%p596_p5) }
 0x179   : > { %v425_v41 = vld [vmem:[#allocation2] sm:$0xff] }
 0x17a   : > { %634 = vmatprep.mubr.msk.f32.mxu0 %vm219_vm1, %v425_v41 }
 0x17e   : > { %v401_v40 = vld [vmem:[#allocation3 + $0x8] sm:$0xff] }
 0x17f   : > { %v400_v38 = vld [vmem:[#allocation3] sm:$0xff] }
 0x180   : > { %405 = vperm.xlu0 %672, %v400_v38  }
 0x184   : > { %410 = vperm.xlu0 %672, %v401_v40  }
 0x1ff   : > { %v406_v43 = vpop.permute.xlu0 %405 }
 0x200   : > { %v419_v44 = vmul.f32 %v597_v42, %v406_v43 }
 0x202   : > { %v421_v46 = vmul.f32 0.03125, %v419_v44 }
 0x203   : > { %v411_v45 = vpop.permute.xlu0 %410 }
 0x204   : > { %v420_v47 = vmul.f32 %v597_v42, %v411_v45  ;;  %v423_v49 = vsub.f32 %v400_v38, %v421_v46 }
 0x206   : > { %v422_v48 = vmul.f32 0.03125, %v420_v47 }
 0x208   : > { %v424_v50 = vsub.f32 %v401_v40, %v422_v48 }
 0x20a   : > { %v645_v51 = vpack.c.bf16 %v424_v50, %v423_v49 }
 0x20c   : > { %646 = vmatprep.subr.bf16.mxu0 %v645_v51 }
 0x20d   : > { %648 = vmatpush3.bf16.msra.mxu0 %v645_v51 }
 0x210   : > { %635 = vmatmul.mubr.msk.f32.vlgmr.msra.gmra.mrb[0].mxu0 %vm219_vm1, %v426_v52 }
 0x2e3   : > { %v636_v53 = vpop.f32.mrb[0].mxu0 }
 0x2e4   : > { %v509_v54 = vmul.f32 %v636_v53, %v424_v50  ;;  %v499_v55 = vpop.f32.mrb[1].mxu0 }
 0x2e5   : > { %v508_v56 = vmul.f32 %v499_v55, %v423_v49 }
 0x2e7   : > { %v510_v57 = vadd.f32 %v509_v54, %v508_v56 }
 0x2e9   : > { %511 = vadd.xlane.f32.xlu1 %v510_v57 }
 0x376   : > { %v512_v58 = vpop.xlane.xlu1 %511 }
 0x377   : > { %v513_v59 = vrot.slane %v512_v58, 4 }
 0x379   : > { %v514_v60 = vadd.f32 %v513_v59, %v512_v58 }
 0x37b   : > { %v515_v61 = vrot.slane %v514_v60, 2 }
 0x37d   : > { %v516_v62 = vadd.f32 %v515_v61, %v514_v60 }
 0x37f   : > { %v517_v63 = vrot.slane %v516_v62, 1 }
 0x381   : > { %v518_v0 = vadd.f32 %v517_v63, %v516_v62 }
 0x383   : > { %649 = vpush %v518_v0 }
 0x3b4   : > { %s650_s19 = spop %649 }
 0x3b5   : > { %521 = sst [smem:[#allocation5]] %s650_s19 }
 0x3b6 PF: > { %p655_p6 = scmp.eq.s32.totalorder %s724_s10, 1  ;;  %s673_s22 = scalar_lea.hbm %s763_s2, 16 }
 0x3b7   : > { %p674_p7 = scmp.ne.s32.totalorder %s763_s2, %s673_s22  ;;  %p679_p10 = scmp.lt.u32.totalorder %s673_s22, %s763_s2 }
 0x3b9   : > { %p675_p8 = pnand %p674_p7, %p655_p6 }
 0x3bb   : > { %p676_p9 = pneg %p675_p8 }
 0x3bd   : > { %p681_p11 = pnand %p679_p10, %p676_p9 }
 0x3bf   : > { %684 = shalt.err (!%p681_p11)
}
 0x3c0   : > { %s702_s27 = smov [#allocation5]  }
 0x3c1   : > { %652 = dma.smem_to_hbm (%p655_p6), %s702_s27, 16, %s763_s2, [#allocation6]  }
 0x3c2   : > { %690 = dma.done.wait (%p655_p6), [#allocation6], 16  }
 0x3c3   : > { %692 = vsyncadd (%p655_p6), [#allocation6], 4294967280 }
 0x3c4   : > { %535 = sfence }
 0x3c5 PF: > { %s13_s9 = sadd.s32 1, %s695_s9  }
 0x3c6   : > { %p10_p12 = scmp.ge.s32.totalorder %s13_s9, 4  }
 0x3c8   :  { %12 = sbr.rel (!%p10_p12) target bundleno = 1 (0x1), region = 67 }
 0x3cf   :  { %541 = vsyncpa [#allocation6], 1 }
 0x3d0   :  { %543 = vsyncpa [#allocation6 + $0x1], 1 }

</bundles_post_ra>
